<compile_context>
chip_gen: v7x
topology: tpu7x:2x2x1
jax: 0.10.0
libtpu: 0.0.40
codegen_flags: <defaults>
</compile_context>

<pallas_src>
import math

import jax
import jax.numpy as jnp
from jax.experimental import pallas as pl
from jax.experimental.pallas import tpu as pltpu


def _round_up(x, m):
    return ((x + m - 1) // m) * m


def _vmem_budget_bytes():
    """Generation-aware scoped-VMEM budget (leave headroom below physical)."""
    try:
        cap = int(pltpu.get_tpu_info().vmem_capacity_bytes)
    except Exception:
        cap = 64 << 20  # conservative fallback: v7x physical VMEM
    # ~48 MiB on v7x (64 MiB phys), ~96 MiB on v5e/v6e (128 MiB phys)
    return (cap * 3) // 4


# ---------------------------------------------------------------------------
# Kernels
# ---------------------------------------------------------------------------
def _linear_single_kernel(x_ref, w_ref, b_ref, o_ref):
    # x_ref: (tm, K)   row tile of the flattened input
    # w_ref: (K, C)    full weight, resident in VMEM (constant index_map)
    # b_ref: (1, C)    bias row
    # o_ref: (tm, C)   output tile
    acc = jnp.dot(x_ref[...], w_ref[...], preferred_element_type=jnp.float32)
    o_ref[...] = (acc + b_ref[...].astype(jnp.float32)).astype(o_ref.dtype)


def _linear_ktiled_kernel(x_ref, w_ref, b_ref, o_ref, acc_ref):
    # x_ref: (tm, tk), w_ref: (tk, C), b_ref: (1, C), o_ref/acc_ref: (tm, C)
    k = pl.program_id(1)

    @pl.when(k == 0)
    def _():
        # Fold the bias into the accumulator init (no separate epilogue add).
        acc_ref[...] = jnp.broadcast_to(
            b_ref[...].astype(jnp.float32), acc_ref.shape)

    acc_ref[...] += jnp.dot(x_ref[...], w_ref[...],
                            preferred_element_type=jnp.float32)

    @pl.when(k == pl.num_programs(1) - 1)
    def _():
        o_ref[...] = acc_ref[...].astype(o_ref.dtype)


# ---------------------------------------------------------------------------
# Tile-plan selection
# ---------------------------------------------------------------------------
_TM_CANDIDATES = (1024, 512, 256, 128, 64, 32, 16, 8)
_TK_CANDIDATES = (2048, 1024, 512, 256, 128)


def _choose_plan(n, inp_dim, num_classes, itemsize, budget):
    """Pick (plan, tm, tk, vmem_usage_bytes)."""
    k_lanes = _round_up(inp_dim, 128)        # internal lane padding of K
    c_lanes = _round_up(num_classes, 128)    # internal lane padding of C

    if n <= 8:
        tms = [max(n, 1)]                    # full-array row block, no edge block
    else:
        tm_cap = _round_up(n, 8)
        tms = [t for t in _TM_CANDIDATES if t <= tm_cap] or [8]

    # Preferred: single-step path (full K resident, no accumulator, no K axis).
    w_bytes = 2 * k_lanes * c_lanes * itemsize          # weight (2-buffer bound)
    for tm in tms:
        usage = (2 * tm * k_lanes * itemsize            # x double buffer
                 + w_bytes
                 + 2 * c_lanes * itemsize               # bias
                 + 2 * tm * c_lanes * itemsize)         # output double buffer
        if usage <= budget:
            return "single", tm, None, usage

    # Fallback: tile K with an f32 accumulator (bias folded into init).
    for tm in tms:
        for tk in _TK_CANDIDATES:
            usage = (2 * tm * tk * itemsize             # x double buffer
                     + 2 * tk * c_lanes * itemsize      # W double buffer
                     + 2 * c_lanes * itemsize           # bias
                     + 2 * tm * c_lanes * itemsize      # output double buffer
                     + tm * c_lanes * 4)                # f32 accumulator
            if usage <= budget:
                return "ktiled", tm, tk, usage

    # TODO(synk): add a class-dimension (C) grid axis for extreme num_classes
    # where even (tm=8, tk=128) blocks exceed the VMEM budget.
    return "ktiled", tms[-1], 128, budget


# ---------------------------------------------------------------------------
# Forward pass
# ---------------------------------------------------------------------------
def ditrl_linear_forward(data, weight, bias, inp_dim):
    """Forward pass of DITRL_Linear.

    data   : arbitrary-shaped array whose total size is a multiple of inp_dim
    weight : (num_classes, inp_dim)   -- PyTorch nn.Linear layout
    bias   : (num_classes,)
    """
    x = jnp.reshape(data, (-1, inp_dim))          # torch.reshape(data, (-1, inp_dim))
    n = x.shape[0]
    num_classes = weight.shape[0]
    dtype = x.dtype
    itemsize = jnp.dtype(dtype).itemsize

    # One-time tiny wrapper transpose -> MXU-native (K, C) rhs orientation,
    # avoids any per-tile in-kernel transpose of the weight.
    w_t = jnp.transpose(weight)                   # (inp_dim, num_classes)
    b_row = jnp.reshape(bias, (1, num_classes))

    budget = _vmem_budget_bytes()
    plan, tm, tk, usage = _choose_plan(n, inp_dim, num_classes, itemsize, budget)
    vmem_limit = int(max(min(usage + (8 << 20), budget), 16 << 20))

    cost = pl.CostEstimate(
        flops=2 * n * inp_dim * num_classes,
        transcendentals=0,
        bytes_accessed=(n * inp_dim + inp_dim * num_classes
                        + n * num_classes + num_classes) * itemsize)

    if plan == "single":
        grid = (pl.cdiv(n, tm),)
        return pl.pallas_call(
            _linear_single_kernel,
            out_shape=jax.ShapeDtypeStruct((n, num_classes), dtype),
            grid_spec=pltpu.PrefetchScalarGridSpec(
                num_scalar_prefetch=0,
                grid=grid,
                in_specs=[
                    pl.BlockSpec((tm, inp_dim), lambda i: (i, 0)),           # x tile
                    pl.BlockSpec((inp_dim, num_classes), lambda i: (0, 0)),  # W resident
                    pl.BlockSpec((1, num_classes), lambda i: (0, 0)),        # bias
                ],
                out_specs=pl.BlockSpec((tm, num_classes), lambda i: (i, 0)),
            ),
            compiler_params=pltpu.CompilerParams(
                dimension_semantics=("parallel",),
                vmem_limit_bytes=vmem_limit),
            cost_estimate=cost,
        )(x, w_t, b_row)

    # ---- K-tiled fallback (full K does not fit in VMEM) ---------------------
    k_pad = _round_up(inp_dim, tk)
    # Zero-pad K only (required for contraction correctness); rows stay unpadded.
    x_p = jnp.pad(x, ((0, 0), (0, k_pad - inp_dim)))
    w_p = jnp.pad(w_t, ((0, k_pad - inp_dim), (0, 0)))
    grid = (pl.cdiv(n, tm), k_pad // tk)
    return pl.pallas_call(
        _linear_ktiled_kernel,
        out_shape=jax.ShapeDtypeStruct((n, num_classes), dtype),
        grid_spec=pltpu.PrefetchScalarGridSpec(
            num_scalar_prefetch=0,
            grid=grid,
            in_specs=[
                pl.BlockSpec((tm, tk), lambda i, k: (i, k)),             # x tile
                pl.BlockSpec((tk, num_classes), lambda i, k: (k, 0)),    # W tile
                pl.BlockSpec((1, num_classes), lambda i, k: (0, 0)),     # bias
            ],
            out_specs=pl.BlockSpec((tm, num_classes), lambda i, k: (i, 0)),
            scratch_shapes=[pltpu.VMEM((tm, num_classes), jnp.float32)],
        ),
        compiler_params=pltpu.CompilerParams(
            dimension_semantics=("parallel", "arbitrary"),
            vmem_limit_bytes=vmem_limit),
        cost_estimate=cost,
    )(x_p, w_p, b_row)


def init_params(key, num_features, num_classes, dtype=jnp.float32):
    """Deterministic init mimicking nn.Linear defaults (uniform(-1/sqrt(fan_in)))."""
    inp_dim = num_features * num_features * 7
    kw, kb = jax.random.split(key)
    bound = 1.0 / math.sqrt(inp_dim)
    weight = jax.random.uniform(kw, (num_classes, inp_dim), dtype,
                                minval=-bound, maxval=bound)
    bias = jax.random.uniform(kb, (num_classes,), dtype,
                              minval=-bound, maxval=bound)
    return weight, bias, inp_dim


if __name__ == "__main__":
    # Small, shape-consistent example:
    #   num_features = 4  -> inp_dim = 4 * 4 * 7 = 112
    #   num_classes  = 8
    #   batch        = 2, input shaped (B, 7, num_features, num_features)
    num_features = 4
    num_classes = 8
    batch = 2

    key = jax.random.PRNGKey(0)
    k_data, k_params = jax.random.split(key)

    weight, bias, inp_dim = init_params(k_params, num_features, num_classes)
    data = jax.random.normal(
        k_data, (batch, 7, num_features, num_features), jnp.float32)

    out = ditrl_linear_forward(data, weight, bias, inp_dim)
    out = jax.block_until_ready(out)

    # sanity check vs. plain-JAX reference (y = x @ W.T + b)
    ref = jnp.reshape(data, (-1, inp_dim)) @ weight.T + bias
    assert out.shape == (batch, num_classes)
    assert jnp.allclose(out, ref, atol=1e-4, rtol=1e-5)

    # TODO(synk): checkpoint loading (torch.load) / save_model are host-side
    # torch I/O and are intentionally not reproduced here.
    print("KERNEL_OK")
</pallas_src>

<mosaic_0001>
module attributes {stable_mosaic.version = 11 : i64} {
  func.func @_linear_single_kernel(%arg0: i32, %arg1: memref<2x112xf32, #tpu.memory_space<vmem>>, %arg2: memref<112x8xf32, #tpu.memory_space<vmem>>, %arg3: memref<1x8xf32, #tpu.memory_space<vmem>>, %arg4: memref<2x8xf32, #tpu.memory_space<vmem>>) attributes {dimension_semantics = [#tpu.dimension_semantics<parallel>], iteration_bounds = array<i64: 1>, scalar_prefetch = 0 : i64, scratch_operands = 0 : i64, tpu.core_type = #tpu.core_type<tc>, window_params = [{transform_indices = @transform_0, window_bounds = array<i64: 2, 112>}, {pipeline_mode = #tpu.pipeline_mode<synchronous>, transform_indices = @transform_1, window_bounds = array<i64: 112, 8>}, {pipeline_mode = #tpu.pipeline_mode<synchronous>, transform_indices = @transform_2, window_bounds = array<i64: 1, 8>}, {transform_indices = @transform_3, window_bounds = array<i64: 2, 8>}]} {
    %c0 = arith.constant 0 : index
    %c0_0 = arith.constant 0 : index
    %0 = vector.load %arg1[%c0, %c0_0] : memref<2x112xf32, #tpu.memory_space<vmem>>, vector<2x112xf32>
    %c0_1 = arith.constant 0 : index
    %c0_2 = arith.constant 0 : index
    %1 = vector.load %arg2[%c0_1, %c0_2] : memref<112x8xf32, #tpu.memory_space<vmem>>, vector<112x8xf32>
    %cst = arith.constant dense<0.000000e+00> : vector<2x8xf32>
    %2 = tpu.matmul %0, %1, %cst {dimension_numbers = #tpu.dot_dimension_numbers<[1], [0], [0], [1], [0, 0, 1, 1], [], []>} : vector<2x112xf32>, vector<112x8xf32>, vector<2x8xf32> -> vector<2x8xf32>
    %c0_3 = arith.constant 0 : index
    %c0_4 = arith.constant 0 : index
    %3 = vector.load %arg3[%c0_3, %c0_4] : memref<1x8xf32, #tpu.memory_space<vmem>>, vector<1x8xf32>
    %4 = vector.broadcast %3 : vector<1x8xf32> to vector<2x8xf32>
    %5 = arith.addf %2, %4 : vector<2x8xf32>
    %c0_5 = arith.constant 0 : index
    %c0_6 = arith.constant 0 : index
    %6 = vector.load %arg4[%c0_5, %c0_6] : memref<2x8xf32, #tpu.memory_space<vmem>>, vector<2x8xf32>
    tpu.vector_store %arg4[%c0_5, %c0_6], %5 {strides = array<i32>} : memref<2x8xf32, #tpu.memory_space<vmem>>, vector<2x8xf32>,
    return
  }
  func.func @transform_0(%arg0: i32) -> (i32, i32) {
    %c0_i32 = arith.constant 0 : i32
    %c0_i32_0 = arith.constant 0 : i32
    return %arg0, %c0_i32 : i32, i32
  }
  func.func @transform_1(%arg0: i32) -> (i32, i32) {
    %c0_i32 = arith.constant 0 : i32
    %c0_i32_0 = arith.constant 0 : i32
    %c0_i32_1 = arith.constant 0 : i32
    return %c0_i32, %c0_i32_0 : i32, i32
  }
  func.func @transform_2(%arg0: i32) -> (i32, i32) {
    %c0_i32 = arith.constant 0 : i32
    %c0_i32_0 = arith.constant 0 : i32
    %c0_i32_1 = arith.constant 0 : i32
    return %c0_i32, %c0_i32_0 : i32, i32
  }
  func.func @transform_3(%arg0: i32) -> (i32, i32) {
    %c0_i32 = arith.constant 0 : i32
    %c0_i32_0 = arith.constant 0 : i32
    return %arg0, %c0_i32 : i32, i32
  }
}

</mosaic_0001>

<bundles_post_ra>
// kernel: tpu_custom_call.1
= control target key start
LH: loop header
LB: loop body
LE: loop exit
PB: predicated region body
PF: predicated region fallthrough
CT: control target
= control target key end

     0   :  { %v224_v3 = vmov 0.0|0.0   ;;  %vm225_vm0 = vmmov 0   ;;  %v226_v6 = vmov 0.0   ;;  %s308_s0 = inlined_call_operand.vmem [shape: f32[2,112], index: 0, kind: input, shape index: {}]   ;;  %s309_s1 = inlined_call_operand.vmem [shape: f32[112,8], index: 1, kind: input, shape index: {}]   ;;  %s310_s2 = inlined_call_operand.vmem [shape: f32[1,8], index: 2, kind: input, shape index: {}]   ;;  %s311_s3 = inlined_call_operand.hbm [shape: f32[2,8], index: 3, kind: output, shape index: {}]  }
   0x1   :  { %v16_v0 = vld [vmem:[%s309_s1] sm:$0xff]  ;;  %v17_v1 = vld [vmem:[%s309_s1 + $0x8] sm:$0xff]  ;;  %v18_v2 = vld [vmem:[%s309_s1 + $0x10] sm:$0xff]  ;;  %175 = vmatprep.subr.bf16.mxu0 %v224_v3  ;;  %172 = vmatprep.mubr.msk.f32.mxu0 %vm225_vm0, %v226_v6 }
   0x2   :  { %v176_v4 = vpack.c.bf16 %v17_v1, %v16_v0  ;;  %v19_v5 = vld [vmem:[%s309_s1 + $0x18] sm:$0xff]  ;;  %v20_v8 = vld [vmem:[%s309_s1 + $0x20] sm:$0xff]  ;;  %v21_v9 = vld [vmem:[%s309_s1 + $0x28] sm:$0xff] }
   0x3   :  { %v179_v7 = vpack.c.bf16 %v19_v5, %v18_v2 }
   0x4   :  { %177 = vmatpush3.bf16.msra.mxu0 %v176_v4 }
   0x5   :  { %178 = vmatprep.subr.bf16.mxu0 %v224_v3 }
   0x6   :  { %8 = vsyncpa [#allocation3], 0  ;;  %v182_v10 = vpack.c.bf16 %v21_v9, %v20_v8  ;;  %v22_v11 = vld [vmem:[%s309_s1 + $0x30] sm:$0xff]  ;;  %v23_v12 = vld [vmem:[%s309_s1 + $0x38] sm:$0xff]  ;;  %vm37_vm1 = vcmask 916480   ;;  %s227_s17 = smov [#allocation2]  }
   0x7   :  { %v185_v13 = vpack.c.bf16 %v23_v12, %v22_v11  ;;  %v24_v14 = vld [vmem:[%s309_s1 + $0x40] sm:$0xff]  ;;  %v25_v15 = vld [vmem:[%s309_s1 + $0x48] sm:$0xff]  ;;  %v26_v17 = vld [vmem:[%s309_s1 + $0x50] sm:$0xff]  ;;  %s119_s18 = sshll.u32 %s227_s17, 4  ;;  %vm111_vm2 = vcmask 58368   ;;  %s120_s18 = int_to_ptr.vmem [resolvable:$true] %s119_s18 }
   0x8   :  { %180 = vmatpush3.bf16.msra.mxu0 %v179_v7  ;;  %v188_v16 = vpack.c.bf16 %v25_v15, %v24_v14  ;;  %v27_v18 = vld [vmem:[%s309_s1 + $0x58] sm:$0xff]  ;;  %v28_v20 = vld [vmem:[%s309_s1 + $0x60] sm:$0xff]  ;;  %v29_v21 = vld [vmem:[%s309_s1 + $0x68] sm:$0xff]  ;;  %s200_s1 = scalar_lea.vmem %s120_s18, 32  ;;  %p205_p1 = scmp.lt.s32.totalorder %s120_s18, %s120_s18 }
   0x9   :  { %181 = vmatprep.subr.bf16.mxu0 %v224_v3  ;;  %v191_v19 = vpack.c.bf16 %v27_v18, %v26_v17  ;;  %v194_v22 = vpack.c.bf16 %v29_v21, %v28_v20  ;;  %v15_v23 = vld [vmem:[%s308_s0] sm:$0x3]  ;;  %p201_p0 = scmp.ne.s32.totalorder %s120_s18, %s200_s1  ;;  %p206_p2 = scmp.lt.s32.totalorder %s200_s1, %s200_s1 }
   0xa   :  { %v127_v24 = vld [vmem:[%s310_s2] ss:$0 sm:$0xff] }
   0xb   :  { %p207_p3 = por %p206_p2, %p205_p1 }
   0xc   :  { %183 = vmatpush3.bf16.msra.mxu0 %v182_v10 }
   0xd   :  { %184 = vmatprep.subr.bf16.mxu0 %v224_v3  ;;  %p208_p4 = pnand %p207_p3, %p201_p0 }
  0x10   :  { %186 = vmatpush3.bf16.msra.mxu0 %v185_v13 }
  0x11   :  { %187 = vmatprep.subr.bf16.mxu0 %v224_v3 }
  0x14   :  { %189 = vmatpush3.bf16.msra.mxu0 %v188_v16 }
  0x15   :  { %190 = vmatprep.subr.bf16.mxu0 %v224_v3 }
  0x18   :  { %192 = vmatpush3.bf16.msra.mxu0 %v191_v19 }
  0x19   :  { %193 = vmatprep.subr.bf16.mxu0 %v224_v3 }
  0x1c   :  { %195 = vmatpush3.bf16.msra.mxu0 %v194_v22 }
  0x1f   :  { %173 = vmatmul.mubr.msk.f32.vlgmr.msra.gmra.mrb[0].mxu0 %vm37_vm1, %v15_v23 }
  0xf2   :  { %v107_v25 = vpop.f32.mrb[0].mxu0 }
  0xf3   :  { %v108_v26 = vadd.f32 %v127_v24, %v107_v25  ;;  %v174_v27 = vpop.f32.mrb[1].mxu0 }
  0xf5   :  { %112 = vst.msk [vmem:[#allocation2] sm:$0x3] %vm111_vm2, %v108_v26 }
  0xf6   :  { %211 = shalt.err (!%p208_p4)
}
  0xf7   :  { %s212_s20 = scalar_lea.hbm %s311_s3, 32 }
  0xf8   :  { %p213_p5 = scmp.ne.s32.totalorder %s311_s3, %s212_s20  ;;  %p216_p6 = scmp.lt.u32.totalorder %s212_s20, %s311_s3 }
  0xfa   :  { %p218_p7 = pnand %p216_p6, %p213_p5 }
  0xfc   :  { %221 = shalt.err (!%p218_p7)
}
  0xfd   :  { %122 = dma.vmem_to_hbm [thread:$0]  %s120_s18, 32, %s311_s3, [#allocation3]  }
  0xfe   :  { %222 = dma.done.wait [#allocation3], 32  }
  0xff   :  { %223 = vsyncadd [#allocation3], 4294967264 }
 0x100   :  { %126 = vsyncpa [#allocation3], 1 }

</bundles_post_ra>
